<compile_context>
chip_gen: v6e
topology: v6e:2x2x1
jax: 0.10.0
libtpu: 0.0.40
codegen_flags: <defaults>
</compile_context>

<pallas_src>
import functools

import jax
import jax.numpy as jnp
from jax.experimental import pallas as pl
from jax.experimental.pallas import tpu as pltpu

LANE = 128
_NEG_INF = -1e30      # bias for padded logit lanes; exp() underflows to exactly 0
TB_MAX = 1024         # batch-tile rows; well under scoped VMEM even on v7x (64 MiB)


def _round_up(n, m):
    return ((n + m - 1) // m) * m


def lenet_kernel(x_ref, w1_ref, b1_ref, w2_ref, b2_ref, w3_ref, b3_ref, o_ref):
    """One (TB, 784) tile of x -> one (TB, 128) lane-dense tile of softmax probs."""
    x = x_ref[...]                                                  # (TB, 784)

    # fc1 + ReLU (f32 accumulation / epilogue; cast back for the next MXU op)
    h1 = jnp.dot(x, w1_ref[...], preferred_element_type=jnp.float32)
    h1 = jnp.maximum(h1 + b1_ref[...], 0.0).astype(w2_ref.dtype)    # (TB, 128)

    # fc2 + ReLU
    h2 = jnp.dot(h1, w2_ref[...], preferred_element_type=jnp.float32)
    h2 = jnp.maximum(h2 + b2_ref[...], 0.0).astype(w3_ref.dtype)    # (TB, 128)

    # fc3 (padded logit lanes get -1e30 bias -> ignored by softmax)
    logits = jnp.dot(h2, w3_ref[...], preferred_element_type=jnp.float32)
    logits = logits + b3_ref[...]                                   # (TB, 128)

    # numerically stable softmax over the lane-dense last axis (exact divide:
    # the approx reciprocal broke the sum-to-1 property within 1e-3)
    m = jnp.max(logits, axis=-1, keepdims=True)
    e = jnp.exp(logits - m)
    denom = jnp.sum(e, axis=-1, keepdims=True)
    o_ref[...] = (e / denom).astype(o_ref.dtype)


def prepare_params(params, compute_dtype=jnp.float32):
    """One-time glue (outside the per-call path): transpose PyTorch (out, in)
    weights to (in, out), zero-pad the 64/32/10-wide dims up to 128 lanes, cast
    matmul operands to `compute_dtype`, keep biases in f32 for the epilogue."""
    h1 = params["w1"].shape[0]
    h2 = params["w2"].shape[0]
    n_out = params["w3"].shape[0]
    h1p, h2p, outp = (_round_up(d, LANE) for d in (h1, h2, n_out))

    def pad2(w, rows, cols):
        return jnp.pad(w, ((0, rows - w.shape[0]), (0, cols - w.shape[1])))

    w1 = pad2(params["w1"].T, 28 * 28, h1p).astype(compute_dtype)
    w2 = pad2(params["w2"].T, h1p, h2p).astype(compute_dtype)
    w3 = pad2(params["w3"].T, h2p, outp).astype(compute_dtype)
    b1 = jnp.pad(params["b1"], (0, h1p - h1)).reshape(1, h1p).astype(jnp.float32)
    b2 = jnp.pad(params["b2"], (0, h2p - h2)).reshape(1, h2p).astype(jnp.float32)
    b3 = jnp.pad(params["b3"], (0, outp - n_out),
                 constant_values=_NEG_INF).reshape(1, outp).astype(jnp.float32)
    return {"w1": w1, "b1": b1, "w2": w2, "b2": b2, "w3": w3, "b3": b3}


@functools.partial(jax.jit, static_argnames=("n_out",))
def lenet_forward(x_nchw, prepared, n_out=10):
    """x_nchw: (B, 1, 28, 28) float32.  prepared: output of prepare_params()."""
    x = x_nchw.reshape(-1, 28 * 28)                     # x.view(-1, 784)
    B = x.shape[0]
    x = x.astype(prepared["w1"].dtype)

    # Batch tile: large for pipelining, but never larger than (padded) batch.
    TB = min(TB_MAX, _round_up(B, 8))
    B_pad = _round_up(B, TB)
    if B_pad != B:
        x = jnp.pad(x, ((0, B_pad - B), (0, 0)))

    d_in = x.shape[1]
    h1p = prepared["w1"].shape[1]
    h2p = prepared["w2"].shape[1]
    outp = prepared["w3"].shape[1]

    resident = lambda i: (0, 0)                         # weights stay in VMEM
    flops = 2 * B_pad * (d_in * h1p + h1p * h2p + h2p * outp)
    bytes_accessed = (
        x.size * x.dtype.itemsize
        + sum(prepared[k].size * prepared[k].dtype.itemsize
              for k in ("w1", "b1", "w2", "b2", "w3", "b3"))
        + B_pad * outp * 4)

    out = pl.pallas_call(
        lenet_kernel,
        out_shape=jax.ShapeDtypeStruct((B_pad, outp), jnp.float32),
        grid=(B_pad // TB,),
        in_specs=[
            pl.BlockSpec((TB, d_in), lambda i: (i, 0)),     # x: streamed tiles
            pl.BlockSpec((d_in, h1p), resident),            # w1 (resident)
            pl.BlockSpec((1, h1p), resident),               # b1
            pl.BlockSpec((h1p, h2p), resident),             # w2
            pl.BlockSpec((1, h2p), resident),               # b2
            pl.BlockSpec((h2p, outp), resident),            # w3
            pl.BlockSpec((1, outp), resident),              # b3
        ],
        out_specs=pl.BlockSpec((TB, outp), lambda i: (i, 0)),
        compiler_params=pltpu.CompilerParams(
            dimension_semantics=("parallel",)),             # 2 TCs on v7x
        cost_estimate=pl.CostEstimate(
            flops=flops,
            transcendentals=B_pad * outp,
            bytes_accessed=bytes_accessed),
    )(x, prepared["w1"], prepared["b1"], prepared["w2"], prepared["b2"],
      prepared["w3"], prepared["b3"])

    return out[:B, :n_out]


def init_params(key, layer_1_w, layer_2_w):
    """Deterministic synthetic params; shapes match nn.Linear (out_features, in_features)."""
    ks = jax.random.split(key, 6)

    def lin(kw, kb, fan_in, fan_out):
        bound = 1.0 / jnp.sqrt(fan_in)
        w = jax.random.uniform(kw, (fan_out, fan_in), jnp.float32, -bound, bound)
        b = jax.random.uniform(kb, (fan_out,), jnp.float32, -bound, bound)
        return w, b

    w1, b1 = lin(ks[0], ks[1], 28 * 28, layer_1_w)
    w2, b2 = lin(ks[2], ks[3], layer_1_w, layer_2_w)
    w3, b3 = lin(ks[4], ks[5], layer_2_w, 10)
    return {"w1": w1, "b1": b1, "w2": w2, "b2": b2, "w3": w3, "b3": b3}


def lenet_reference(x_nchw, p):
    x = x_nchw.reshape(-1, 28 * 28)
    h1 = jnp.maximum(x @ p["w1"].T + p["b1"], 0.0)
    h2 = jnp.maximum(h1 @ p["w2"].T + p["b2"], 0.0)
    logits = h2 @ p["w3"].T + p["b3"]
    return jax.nn.softmax(logits, axis=-1)


if __name__ == "__main__":
    key = jax.random.PRNGKey(0)
    k_x, k_p = jax.random.split(key)

    batch, layer_1_w, layer_2_w = 8, 64, 32
    x = jax.random.normal(k_x, (batch, 1, 28, 28), jnp.float32)   # NCHW, like PyTorch
    params = init_params(k_p, layer_1_w, layer_2_w)
    ref = lenet_reference(x, params)

    # f32 matmul operands (exact path)
    out_f32 = lenet_forward(x, prepare_params(params, jnp.float32))
    out_f32 = jax.block_until_ready(out_f32)
    assert out_f32.shape == (batch, 10)
    assert jnp.allclose(out_f32, ref, atol=1e-4, rtol=1e-4), "f32 mismatch vs reference"
    assert jnp.allclose(jnp.sum(out_f32, axis=-1), 1.0, atol=1e-5), "rows must sum to 1"

    # bf16 matmul operands with f32 accumulation (halves HBM traffic on v6e/v7x)
    out_bf16 = lenet_forward(x, prepare_params(params, jnp.bfloat16))
    out_bf16 = jax.block_until_ready(out_bf16)
    assert out_bf16.shape == (batch, 10)
    assert jnp.allclose(out_bf16, ref, atol=3e-2, rtol=3e-2), "bf16 mismatch vs reference"
    assert jnp.allclose(jnp.sum(out_bf16, axis=-1), 1.0, atol=1e-4), "bf16 rows must sum to 1"

    print("KERNEL_OK")
</pallas_src>

<mosaic_0001>
module attributes {stable_mosaic.version = 11 : i64} {
  func.func @lenet_kernel(%arg0: i32, %arg1: memref<8x784xf32, #tpu.memory_space<vmem>>, %arg2: memref<784x128xf32, #tpu.memory_space<vmem>>, %arg3: memref<1x128xf32, #tpu.memory_space<vmem>>, %arg4: memref<128x128xf32, #tpu.memory_space<vmem>>, %arg5: memref<1x128xf32, #tpu.memory_space<vmem>>, %arg6: memref<128x128xf32, #tpu.memory_space<vmem>>, %arg7: memref<1x128xf32, #tpu.memory_space<vmem>>, %arg8: memref<8x128xf32, #tpu.memory_space<vmem>>) attributes {dimension_semantics = [#tpu.dimension_semantics<parallel>], iteration_bounds = array<i64: 1>, scalar_prefetch = 0 : i64, scratch_operands = 0 : i64, tpu.core_type = #tpu.core_type<tc>, window_params = [{transform_indices = @transform_0, window_bounds = array<i64: 8, 784>}, {pipeline_mode = #tpu.pipeline_mode<synchronous>, transform_indices = @transform_1, window_bounds = array<i64: 784, 128>}, {pipeline_mode = #tpu.pipeline_mode<synchronous>, transform_indices = @transform_2, window_bounds = array<i64: 1, 128>}, {pipeline_mode = #tpu.pipeline_mode<synchronous>, transform_indices = @transform_3, window_bounds = array<i64: 128, 128>}, {pipeline_mode = #tpu.pipeline_mode<synchronous>, transform_indices = @transform_4, window_bounds = array<i64: 1, 128>}, {pipeline_mode = #tpu.pipeline_mode<synchronous>, transform_indices = @transform_5, window_bounds = array<i64: 128, 128>}, {pipeline_mode = #tpu.pipeline_mode<synchronous>, transform_indices = @transform_6, window_bounds = array<i64: 1, 128>}, {transform_indices = @transform_7, window_bounds = array<i64: 8, 128>}]} {
    %c0 = arith.constant 0 : index
    %c0_0 = arith.constant 0 : index
    %0 = vector.load %arg1[%c0, %c0_0] : memref<8x784xf32, #tpu.memory_space<vmem>>, vector<8x784xf32>
    %c0_1 = arith.constant 0 : index
    %c0_2 = arith.constant 0 : index
    %1 = vector.load %arg2[%c0_1, %c0_2] : memref<784x128xf32, #tpu.memory_space<vmem>>, vector<784x128xf32>
    %cst = arith.constant dense<0.000000e+00> : vector<8x128xf32>
    %2 = tpu.matmul %0, %1, %cst {dimension_numbers = #tpu.dot_dimension_numbers<[1], [0], [0], [1], [0, 0, 1, 1], [], []>} : vector<8x784xf32>, vector<784x128xf32>, vector<8x128xf32> -> vector<8x128xf32>
    %c0_3 = arith.constant 0 : index
    %c0_4 = arith.constant 0 : index
    %3 = vector.load %arg3[%c0_3, %c0_4] : memref<1x128xf32, #tpu.memory_space<vmem>>, vector<1x128xf32>
    %4 = vector.broadcast %3 : vector<1x128xf32> to vector<8x128xf32>
    %5 = arith.addf %2, %4 : vector<8x128xf32>
    %cst_5 = arith.constant 0.000000e+00 : f32
    %6 = vector.broadcast %cst_5 : f32 to vector<8x128xf32>
    %7 = arith.maximumf %5, %6 : vector<8x128xf32>
    %c0_6 = arith.constant 0 : index
    %c0_7 = arith.constant 0 : index
    %8 = vector.load %arg4[%c0_6, %c0_7] : memref<128x128xf32, #tpu.memory_space<vmem>>, vector<128x128xf32>
    %cst_8 = arith.constant dense<0.000000e+00> : vector<8x128xf32>
    %9 = tpu.matmul %7, %8, %cst_8 {dimension_numbers = #tpu.dot_dimension_numbers<[1], [0], [0], [1], [0, 0, 1, 1], [], []>} : vector<8x128xf32>, vector<128x128xf32>, vector<8x128xf32> -> vector<8x128xf32>
    %c0_9 = arith.constant 0 : index
    %c0_10 = arith.constant 0 : index
    %10 = vector.load %arg5[%c0_9, %c0_10] : memref<1x128xf32, #tpu.memory_space<vmem>>, vector<1x128xf32>
    %11 = vector.broadcast %10 : vector<1x128xf32> to vector<8x128xf32>
    %12 = arith.addf %9, %11 : vector<8x128xf32>
    %cst_11 = arith.constant 0.000000e+00 : f32
    %13 = vector.broadcast %cst_11 : f32 to vector<8x128xf32>
    %14 = arith.maximumf %12, %13 : vector<8x128xf32>
    %c0_12 = arith.constant 0 : index
    %c0_13 = arith.constant 0 : index
    %15 = vector.load %arg6[%c0_12, %c0_13] : memref<128x128xf32, #tpu.memory_space<vmem>>, vector<128x128xf32>
    %cst_14 = arith.constant dense<0.000000e+00> : vector<8x128xf32>
    %16 = tpu.matmul %14, %15, %cst_14 {dimension_numbers = #tpu.dot_dimension_numbers<[1], [0], [0], [1], [0, 0, 1, 1], [], []>} : vector<8x128xf32>, vector<128x128xf32>, vector<8x128xf32> -> vector<8x128xf32>
    %c0_15 = arith.constant 0 : index
    %c0_16 = arith.constant 0 : index
    %17 = vector.load %arg7[%c0_15, %c0_16] : memref<1x128xf32, #tpu.memory_space<vmem>>, vector<1x128xf32>
    %18 = vector.broadcast %17 : vector<1x128xf32> to vector<8x128xf32>
    %19 = arith.addf %16, %18 : vector<8x128xf32>
    %cst_17 = arith.constant dense<0xFF800000> : vector<8xf32>
    %20 = vector.multi_reduction <maximumf>, %19, %cst_17 [1] : vector<8x128xf32> to vector<8xf32>
    %21 = vector.shape_cast %20 : vector<8xf32> to vector<8x1xf32>
    %22 = vector.broadcast %21 : vector<8x1xf32> to vector<8x128xf32>
    %23 = arith.subf %19, %22 : vector<8x128xf32>
    %24 = math.exp %23 : vector<8x128xf32>
    %cst_18 = arith.constant dense<0.000000e+00> : vector<8xf32>
    %25 = vector.multi_reduction <add>, %24, %cst_18 [1] : vector<8x128xf32> to vector<8xf32>
    %26 = vector.shape_cast %25 : vector<8xf32> to vector<8x1xf32>
    %27 = vector.broadcast %26 : vector<8x1xf32> to vector<8x128xf32>
    %28 = arith.divf %24, %27 : vector<8x128xf32>
    %c0_19 = arith.constant 0 : index
    %c0_20 = arith.constant 0 : index
    %29 = vector.load %arg8[%c0_19, %c0_20] : memref<8x128xf32, #tpu.memory_space<vmem>>, vector<8x128xf32>
    tpu.vector_store %arg8[%c0_19, %c0_20], %28 {strides = array<i32>} : memref<8x128xf32, #tpu.memory_space<vmem>>, vector<8x128xf32>,
    return
  }
  func.func @transform_0(%arg0: i32) -> (i32, i32) {
    %c0_i32 = arith.constant 0 : i32
    %c0_i32_0 = arith.constant 0 : i32
    return %arg0, %c0_i32 : i32, i32
  }
  func.func @transform_1(%arg0: i32) -> (i32, i32) {
    %c0_i32 = arith.constant 0 : i32
    %c0_i32_0 = arith.constant 0 : i32
    %c0_i32_1 = arith.constant 0 : i32
    return %c0_i32, %c0_i32_0 : i32, i32
  }
  func.func @transform_2(%arg0: i32) -> (i32, i32) {
    %c0_i32 = arith.constant 0 : i32
    %c0_i32_0 = arith.constant 0 : i32
    %c0_i32_1 = arith.constant 0 : i32
    return %c0_i32, %c0_i32_0 : i32, i32
  }
  func.func @transform_3(%arg0: i32) -> (i32, i32) {
    %c0_i32 = arith.constant 0 : i32
    %c0_i32_0 = arith.constant 0 : i32
    %c0_i32_1 = arith.constant 0 : i32
    return %c0_i32, %c0_i32_0 : i32, i32
  }
  func.func @transform_4(%arg0: i32) -> (i32, i32) {
    %c0_i32 = arith.constant 0 : i32
    %c0_i32_0 = arith.constant 0 : i32
    %c0_i32_1 = arith.constant 0 : i32
    return %c0_i32, %c0_i32_0 : i32, i32
  }
  func.func @transform_5(%arg0: i32) -> (i32, i32) {
    %c0_i32 = arith.constant 0 : i32
    %c0_i32_0 = arith.constant 0 : i32
    %c0_i32_1 = arith.constant 0 : i32
    return %c0_i32, %c0_i32_0 : i32, i32
  }
  func.func @transform_6(%arg0: i32) -> (i32, i32) {
    %c0_i32 = arith.constant 0 : i32
    %c0_i32_0 = arith.constant 0 : i32
    %c0_i32_1 = arith.constant 0 : i32
    return %c0_i32, %c0_i32_0 : i32, i32
  }
  func.func @transform_7(%arg0: i32) -> (i32, i32) {
    %c0_i32 = arith.constant 0 : i32
    %c0_i32_0 = arith.constant 0 : i32
    return %arg0, %c0_i32 : i32, i32
  }
}

</mosaic_0001>

<bundles_post_ra>
// kernel: lenet_forward.1
= control target key start
LH: loop header
LB: loop body
LE: loop exit
PB: predicated region body
PF: predicated region fallthrough
CT: control target
= control target key end

     0   :  { %12 = vsyncpa [#allocation3], 0  ;;  %s1385_s0 = inlined_call_operand.vmem [shape: f32[8,784], index: 0, kind: input, shape index: {}]   ;;  %s1386_s1 = inlined_call_operand.vmem [shape: f32[784,128], index: 1, kind: input, shape index: {}]   ;;  %s1387_s2 = inlined_call_operand.vmem [shape: f32[1,128], index: 2, kind: input, shape index: {}]   ;;  %s1388_s3 = inlined_call_operand.hbm [shape: f32[128,128], index: 3, kind: input, shape index: {}]   ;;  %s1389_s4 = inlined_call_operand.vmem [shape: f32[1,128], index: 4, kind: input, shape index: {}]   ;;  %s1390_s5 = inlined_call_operand.hbm [shape: f32[128,128], index: 5, kind: input, shape index: {}]   ;;  %s1391_s6 = inlined_call_operand.vmem [shape: f32[1,128], index: 6, kind: input, shape index: {}]   ;;  %s1392_s7 = inlined_call_operand.hbm [shape: f32[8,128], index: 7, kind: output, shape index: {}]  }
   0x1   :  { %13 = vsyncpa [#allocation6], 0 }
   0x2   :  { %14 = vsyncpa [#allocation4], 0  ;;  %s965_s24 = smov [#allocation2]  }
   0x3   :  { %s26_s25 = sshll.u32 %s965_s24, 4  ;;  %s27_s25 = int_to_ptr.vmem [resolvable:$true] %s26_s25 }
   0x4   :  { %s907_s26 = scalar_lea.vmem %s27_s25, 2048  ;;  %p912_p1 = scmp.lt.s32.totalorder %s27_s25, %s27_s25 }
   0x5   :  { %p908_p0 = scmp.ne.s32.totalorder %s27_s25, %s907_s26  ;;  %p913_p2 = scmp.lt.s32.totalorder %s907_s26, %s907_s26 }
   0x7   :  { %p914_p3 = por %p913_p2, %p912_p1 }
   0x9   :  { %p915_p4 = pnand %p914_p3, %p908_p0 }
   0xb   :  { %918 = shalt.err (!%p915_p4)
}
   0xc   :  { %s966_s27 = smov 128   ;;  %s967_s28 = smov 8  }
   0xd   :  { %32 = dma.hbm_to_vmem [thread:$0]  %s1388_s3, 2048, %s27_s25, [#allocation3], %s966_s27, %s966_s27, %s967_s28  }
   0xe   :  { %s968_s8 = smov [#allocation5]  }
   0xf   :  { %s40_s9 = sshll.u32 %s968_s8, 4  ;;  %s41_s9 = int_to_ptr.vmem [resolvable:$true] %s40_s9 }
  0x10   :  { %s927_s10 = scalar_lea.vmem %s41_s9, 2048  ;;  %p932_p6 = scmp.lt.s32.totalorder %s41_s9, %s41_s9 }
  0x11   :  { %p928_p5 = scmp.ne.s32.totalorder %s41_s9, %s927_s10  ;;  %p933_p7 = scmp.lt.s32.totalorder %s927_s10, %s927_s10 }
  0x13   :  { %p934_p8 = por %p933_p7, %p932_p6 }
  0x15   :  { %p935_p9 = pnand %p934_p8, %p928_p5 }
  0x17   :  { %938 = shalt.err (!%p935_p9)
}
  0x18   :  { %46 = dma.hbm_to_vmem [thread:$0]  %s1390_s5, 2048, %s41_s9, [#allocation6], %s966_s27, %s966_s27, %s967_s28  }
  0x19   :  { %959 = dma.done.wait [#allocation3], 2048  }
  0x1a   :  { %960 = vsyncadd [#allocation3], 4294965248 }
  0x1b   :  { %961 = dma.done.wait [#allocation6], 2048  }
  0x1c   :  { %962 = vsyncadd [#allocation6], 4294965248  ;;  %v93_v0 = vld [vmem:[%s1386_s1 + $0xf8] sm:$0xff]  ;;  %v92_v2 = vld [vmem:[%s1386_s1 + $0xf0] sm:$0xff]  ;;  %vm167_vm0 = vcmask 130048   ;;  %vm970_vm1 = vmmov 0  }
  0x1d   :  { %v77_v1 = vld [vmem:[%s1386_s1 + $0x78] sm:$0xff]  ;;  %669 = vmatprep.subr.mxu0 %v93_v0  ;;  %v76_v4 = vld [vmem:[%s1386_s1 + $0x70] sm:$0xff]  ;;  %v91_v6 = vld [vmem:[%s1386_s1 + $0xe8] sm:$0xff] }
  0x1e   :  { %v125_v3 = vld [vmem:[%s1386_s1 + $0x1f8] sm:$0xff]  ;;  %670 = vmatpush3.msra.mxu0 %v77_v1  ;;  %v124_v7 = vld [vmem:[%s1386_s1 + $0x1f0] sm:$0xff]  ;;  %v75_v8 = vld [vmem:[%s1386_s1 + $0x68] sm:$0xff] }
  0x1f   :  { %v109_v5 = vld [vmem:[%s1386_s1 + $0x178] sm:$0xff]  ;;  %704 = vmatprep.subr.mxu1 %v125_v3  ;;  %671 = vmatprep.subr.mxu0 %v92_v2  ;;  %v108_v9 = vld [vmem:[%s1386_s1 + $0x170] sm:$0xff]  ;;  %v123_v10 = vld [vmem:[%s1386_s1 + $0x1e8] sm:$0xff] }
  0x20   :  { %705 = vmatpush3.msra.mxu1 %v109_v5  ;;  %672 = vmatpush3.msra.mxu0 %v76_v4  ;;  %v90_v11 = vld [vmem:[%s1386_s1 + $0xe0] sm:$0xff]  ;;  %v107_v12 = vld [vmem:[%s1386_s1 + $0x168] sm:$0xff]  ;;  %v89_v15 = vld [vmem:[%s1386_s1 + $0xd8] sm:$0xff] }
  0x21   :  { %706 = vmatprep.subr.mxu1 %v124_v7  ;;  %673 = vmatprep.subr.mxu0 %v91_v6  ;;  %v74_v13 = vld [vmem:[%s1386_s1 + $0x60] sm:$0xff]  ;;  %v73_v17 = vld [vmem:[%s1386_s1 + $0x58] sm:$0xff]  ;;  %v88_v19 = vld [vmem:[%s1386_s1 + $0xd0] sm:$0xff] }
  0x22   :  { %707 = vmatpush3.msra.mxu1 %v108_v9  ;;  %v122_v14 = vld [vmem:[%s1386_s1 + $0x1e0] sm:$0xff]  ;;  %674 = vmatpush3.msra.mxu0 %v75_v8  ;;  %v121_v18 = vld [vmem:[%s1386_s1 + $0x1d8] sm:$0xff]  ;;  %v72_v21 = vld [vmem:[%s1386_s1 + $0x50] sm:$0xff] }
  0x23   :  { %708 = vmatprep.subr.mxu1 %v123_v10  ;;  %v106_v16 = vld [vmem:[%s1386_s1 + $0x160] sm:$0xff]  ;;  %675 = vmatprep.subr.mxu0 %v90_v11  ;;  %v105_v20 = vld [vmem:[%s1386_s1 + $0x158] sm:$0xff]  ;;  %v120_v22 = vld [vmem:[%s1386_s1 + $0x1d0] sm:$0xff] }
  0x24   :  { %709 = vmatpush3.msra.mxu1 %v107_v12  ;;  %676 = vmatpush3.msra.mxu0 %v74_v13  ;;  %v87_v23 = vld [vmem:[%s1386_s1 + $0xc8] sm:$0xff]  ;;  %v104_v24 = vld [vmem:[%s1386_s1 + $0x150] sm:$0xff]  ;;  %v86_v27 = vld [vmem:[%s1386_s1 + $0xc0] sm:$0xff] }
  0x25   :  { %710 = vmatprep.subr.mxu1 %v122_v14  ;;  %677 = vmatprep.subr.mxu0 %v89_v15  ;;  %v71_v25 = vld [vmem:[%s1386_s1 + $0x48] sm:$0xff]  ;;  %v70_v29 = vld [vmem:[%s1386_s1 + $0x40] sm:$0xff]  ;;  %v85_v31 = vld [vmem:[%s1386_s1 + $0xb8] sm:$0xff]  ;;  %v969_v14 = vmov 0.0  }
  0x26   :  { %711 = vmatpush3.msra.mxu1 %v106_v16  ;;  %678 = vmatpush3.msra.mxu0 %v73_v17  ;;  %v119_v26 = vld [vmem:[%s1386_s1 + $0x1c8] sm:$0xff]  ;;  %v118_v30 = vld [vmem:[%s1386_s1 + $0x1c0] sm:$0xff]  ;;  %v69_v33 = vld [vmem:[%s1386_s1 + $0x38] sm:$0xff] }
  0x27   :  { %712 = vmatprep.subr.mxu1 %v121_v18  ;;  %679 = vmatprep.subr.mxu0 %v88_v19  ;;  %v103_v28 = vld [vmem:[%s1386_s1 + $0x148] sm:$0xff]  ;;  %v102_v32 = vld [vmem:[%s1386_s1 + $0x140] sm:$0xff]  ;;  %v117_v34 = vld [vmem:[%s1386_s1 + $0x1b8] sm:$0xff] }
  0x28   :  { %713 = vmatpush3.msra.mxu1 %v105_v20  ;;  %680 = vmatpush3.msra.mxu0 %v72_v21  ;;  %v84_v35 = vld [vmem:[%s1386_s1 + $0xb0] sm:$0xff]  ;;  %v101_v36 = vld [vmem:[%s1386_s1 + $0x138] sm:$0xff]  ;;  %v83_v39 = vld [vmem:[%s1386_s1 + $0xa8] sm:$0xff] }
  0x29   :  { %714 = vmatprep.subr.mxu1 %v120_v22  ;;  %681 = vmatprep.subr.mxu0 %v87_v23  ;;  %v68_v37 = vld [vmem:[%s1386_s1 + $0x30] sm:$0xff]  ;;  %v67_v41 = vld [vmem:[%s1386_s1 + $0x28] sm:$0xff]  ;;  %v82_v43 = vld [vmem:[%s1386_s1 + $0xa0] sm:$0xff] }
  0x2a   :  { %715 = vmatpush3.msra.mxu1 %v104_v24  ;;  %682 = vmatpush3.msra.mxu0 %v71_v25  ;;  %v116_v38 = vld [vmem:[%s1386_s1 + $0x1b0] sm:$0xff]  ;;  %v115_v42 = vld [vmem:[%s1386_s1 + $0x1a8] sm:$0xff]  ;;  %v66_v45 = vld [vmem:[%s1386_s1 + $0x20] sm:$0xff] }
  0x2b   :  { %716 = vmatprep.subr.mxu1 %v119_v26  ;;  %683 = vmatprep.subr.mxu0 %v86_v27  ;;  %v100_v40 = vld [vmem:[%s1386_s1 + $0x130] sm:$0xff]  ;;  %v99_v44 = vld [vmem:[%s1386_s1 + $0x128] sm:$0xff]  ;;  %v114_v46 = vld [vmem:[%s1386_s1 + $0x1a0] sm:$0xff] }
  0x2c   :  { %717 = vmatpush3.msra.mxu1 %v103_v28  ;;  %684 = vmatpush3.msra.mxu0 %v70_v29  ;;  %v81_v47 = vld [vmem:[%s1386_s1 + $0x98] sm:$0xff]  ;;  %v98_v48 = vld [vmem:[%s1386_s1 + $0x120] sm:$0xff]  ;;  %v80_v51 = vld [vmem:[%s1386_s1 + $0x90] sm:$0xff] }
  0x2d   :  { %718 = vmatprep.subr.mxu1 %v118_v30  ;;  %685 = vmatprep.subr.mxu0 %v85_v31  ;;  %v65_v49 = vld [vmem:[%s1386_s1 + $0x18] sm:$0xff]  ;;  %v64_v53 = vld [vmem:[%s1386_s1 + $0x10] sm:$0xff]  ;;  %v79_v55 = vld [vmem:[%s1386_s1 + $0x88] sm:$0xff] }
  0x2e   :  { %719 = vmatpush3.msra.mxu1 %v102_v32  ;;  %686 = vmatpush3.msra.mxu0 %v69_v33  ;;  %v113_v50 = vld [vmem:[%s1386_s1 + $0x198] sm:$0xff]  ;;  %v112_v54 = vld [vmem:[%s1386_s1 + $0x190] sm:$0xff]  ;;  %v63_v57 = vld [vmem:[%s1386_s1 + $0x8] sm:$0xff] }
  0x2f   :  { %720 = vmatprep.subr.mxu1 %v117_v34  ;;  %687 = vmatprep.subr.mxu0 %v84_v35  ;;  %v97_v52 = vld [vmem:[%s1386_s1 + $0x118] sm:$0xff]  ;;  %v96_v56 = vld [vmem:[%s1386_s1 + $0x110] sm:$0xff]  ;;  %v111_v58 = vld [vmem:[%s1386_s1 + $0x188] sm:$0xff] }
  0x30   :  { %721 = vmatpush3.msra.mxu1 %v101_v36  ;;  %688 = vmatpush3.msra.mxu0 %v68_v37  ;;  %v78_v59 = vld [vmem:[%s1386_s1 + $0x80] sm:$0xff]  ;;  %v56_v60 = vld [vmem:[%s1385_s0 + $0x8] sm:$0xff]  ;;  %v157_v1 = vld [vmem:[%s1386_s1 + $0x2f8] sm:$0xff] }
  0x31   :  { %722 = vmatprep.subr.mxu1 %v116_v38  ;;  %689 = vmatprep.subr.mxu0 %v83_v39  ;;  %v62_v61 = vld [vmem:[%s1386_s1] sm:$0xff]  ;;  %v95_v62 = vld [vmem:[%s1386_s1 + $0x108] sm:$0xff]  ;;  %v58_v3 = vld [vmem:[%s1385_s0 + $0x18] sm:$0xff] }
  0x32   :  { %723 = vmatpush3.msra.mxu1 %v100_v40  ;;  %690 = vmatpush3.msra.mxu0 %v67_v41  ;;  %v55_v63 = vld [vmem:[%s1385_s0] sm:$0xff]  ;;  %v141_v4 = vld [vmem:[%s1386_s1 + $0x278] sm:$0xff]  ;;  %v57_v5 = vld [vmem:[%s1385_s0 + $0x10] sm:$0xff] }
  0x33   :  { %724 = vmatprep.subr.mxu1 %v115_v42  ;;  %691 = vmatprep.subr.mxu0 %v82_v43  ;;  %v110_v0 = vld [vmem:[%s1386_s1 + $0x180] sm:$0xff]  ;;  %v156_v6 = vld [vmem:[%s1386_s1 + $0x2f0] sm:$0xff]  ;;  %v60_v8 = vld [vmem:[%s1385_s0 + $0x28] sm:$0xff] }
  0x34   :  { %725 = vmatpush3.msra.mxu1 %v99_v44  ;;  %692 = vmatpush3.msra.mxu0 %v66_v45  ;;  %v94_v2 = vld [vmem:[%s1386_s1 + $0x100] sm:$0xff]  ;;  %v140_v7 = vld [vmem:[%s1386_s1 + $0x270] sm:$0xff]  ;;  %v155_v9 = vld [vmem:[%s1386_s1 + $0x2e8] sm:$0xff] }
  0x35   :  { %726 = vmatprep.subr.mxu1 %v114_v46  ;;  %693 = vmatprep.subr.mxu0 %v81_v47  ;;  %v139_v10 = vld [vmem:[%s1386_s1 + $0x268] sm:$0xff]  ;;  %v154_v12 = vld [vmem:[%s1386_s1 + $0x2e0] sm:$0xff]  ;;  %v153_v16 = vld [vmem:[%s1386_s1 + $0x2d8] sm:$0xff] }
  0x36   :  { %727 = vmatpush3.msra.mxu1 %v98_v48  ;;  %694 = vmatpush3.msra.mxu0 %v65_v49  ;;  %v159_v11 = vld [vmem:[%s1386_s1 + $0x308] sm:$0xff]  ;;  %v138_v13 = vld [vmem:[%s1386_s1 + $0x260] sm:$0xff]  ;;  %v137_v17 = vld [vmem:[%s1386_s1 + $0x258] sm:$0xff] }
  0x37   :  { %728 = vmatprep.subr.mxu1 %v113_v50  ;;  %695 = vmatprep.subr.mxu0 %v80_v51  ;;  %v158_v15 = vld [vmem:[%s1386_s1 + $0x300] sm:$0xff]  ;;  %v61_v18 = vld [vmem:[%s1385_s0 + $0x30] sm:$0xff]  ;;  %v151_v21 = vld [vmem:[%s1386_s1 + $0x2c8] sm:$0xff] }
  0x38   :  { %729 = vmatpush3.msra.mxu1 %v97_v52  ;;  %696 = vmatpush3.msra.mxu0 %v64_v53  ;;  %v152_v19 = vld [vmem:[%s1386_s1 + $0x2d0] sm:$0xff]  ;;  %v135_v22 = vld [vmem:[%s1386_s1 + $0x248] sm:$0xff]  ;;  %v150_v23 = vld [vmem:[%s1386_s1 + $0x2c0] sm:$0xff] }
  0x39   :  { %730 = vmatprep.subr.mxu1 %v112_v54  ;;  %697 = vmatprep.subr.mxu0 %v79_v55  ;;  %v136_v20 = vld [vmem:[%s1386_s1 + $0x250] sm:$0xff]  ;;  %v134_v24 = vld [vmem:[%s1386_s1 + $0x240] sm:$0xff]  ;;  %v149_v25 = vld [vmem:[%s1386_s1 + $0x2b8] sm:$0xff] }
  0x3a   :  { %731 = vmatpush3.msra.mxu1 %v96_v56  ;;  %698 = vmatpush3.msra.mxu0 %v63_v57  ;;  %v133_v26 = vld [vmem:[%s1386_s1 + $0x238] sm:$0xff]  ;;  %v148_v27 = vld [vmem:[%s1386_s1 + $0x2b0] sm:$0xff]  ;;  %v147_v29 = vld [vmem:[%s1386_s1 + $0x2a8] sm:$0xff] }
  0x3b   :  { %732 = vmatprep.subr.mxu1 %v111_v58  ;;  %699 = vmatprep.subr.mxu0 %v78_v59  ;;  %v132_v28 = vld [vmem:[%s1386_s1 + $0x230] sm:$0xff]  ;;  %v131_v30 = vld [vmem:[%s1386_s1 + $0x228] sm:$0xff]  ;;  %v146_v31 = vld [vmem:[%s1386_s1 + $0x2a0] sm:$0xff] }
  0x3c   :  { %235 = vmatprep.mubr.f32.mxu0 %v56_v60  ;;  %700 = vmatpush3.msra.mxu0 %v62_v61  ;;  %v130_v32 = vld [vmem:[%s1386_s1 + $0x220] sm:$0xff]  ;;  %v145_v33 = vld [vmem:[%s1386_s1 + $0x298] sm:$0xff]  ;;  %v144_v35 = vld [vmem:[%s1386_s1 + $0x290] sm:$0xff] }
  0x3d   :  { %733 = vmatpush3.msra.mxu1 %v95_v62  ;;  %236 = vmatmul.mubr.f32.vlgmr.msra.gmra.mxu0 %v55_v63  ;;  %v129_v34 = vld [vmem:[%s1386_s1 + $0x218] sm:$0xff]  ;;  %v128_v36 = vld [vmem:[%s1386_s1 + $0x210] sm:$0xff]  ;;  %v143_v37 = vld [vmem:[%s1386_s1 + $0x288] sm:$0xff] }
  0x3e   :  { %734 = vmatprep.subr.mxu1 %v110_v0  ;;  %739 = vmatprep.subr.mxu0 %v157_v1  ;;  %v127_v38 = vld [vmem:[%s1386_s1 + $0x208] sm:$0xff]  ;;  %v142_v39 = vld [vmem:[%s1386_s1 + $0x280] sm:$0xff]  ;;  %v467_v42 = vld [vmem:[#allocation2 + $0x78] sm:$0xff] }
  0x3f   :  { %735 = vmatpush3.msra.mxu1 %v94_v2  ;;  %305 = vmatprep.mubr.f32.mxu1 %v58_v3  ;;  %v126_v40 = vld [vmem:[%s1386_s1 + $0x200] sm:$0xff]  ;;  %v466_v43 = vld [vmem:[#allocation2 + $0x70] sm:$0xff]  ;;  %v465_v44 = vld [vmem:[#allocation2 + $0x68] sm:$0xff] }
  0x40   :  { %740 = vmatpush3.msra.mxu0 %v141_v4  ;;  %306 = vmatmul.mubr.f32.vlgmr.msra.gmra.mxu1 %v57_v5  ;;  %v59_v41 = vld [vmem:[%s1385_s0 + $0x20] sm:$0xff]  ;;  %v463_v46 = vld [vmem:[#allocation2 + $0x58] sm:$0xff]  ;;  %v462_v47 = vld [vmem:[#allocation2 + $0x50] sm:$0xff] }
  0x41   :  { %741 = vmatprep.subr.mxu0 %v156_v6  ;;  %375 = vmatprep.mubr.f32.mxu0 %v60_v8  ;;  %v464_v45 = vld [vmem:[#allocation2 + $0x60] sm:$0xff]  ;;  %v461_v48 = vld [vmem:[#allocation2 + $0x48] sm:$0xff]  ;;  %v459_v50 = vld [vmem:[#allocation2 + $0x38] sm:$0xff] }
  0x42   :  { %742 = vmatpush3.msra.mxu0 %v140_v7  ;;  %811 = vmatprep.subr.mxu1 %v969_v14  ;;  %v460_v49 = vld [vmem:[#allocation2 + $0x40] sm:$0xff]  ;;  %v458_v51 = vld [vmem:[#allocation2 + $0x30] sm:$0xff]  ;;  %v457_v52 = vld [vmem:[#allocation2 + $0x28] sm:$0xff] }
  0x43   :  { %743 = vmatprep.subr.mxu0 %v155_v9  ;;  %812 = vmatpush3.msra.mxu1 %v159_v11  ;;  %v456_v53 = vld [vmem:[#allocation2 + $0x20] sm:$0xff]  ;;  %v455_v54 = vld [vmem:[#allocation2 + $0x18] sm:$0xff]  ;;  %v454_v55 = vld [vmem:[#allocation2 + $0x10] sm:$0xff] }
  0x44   :  { %744 = vmatpush3.msra.mxu0 %v139_v10  ;;  %813 = vmatprep.subr.mxu1 %v969_v14  ;;  %v453_v56 = vld [vmem:[#allocation2 + $0x8] sm:$0xff]  ;;  %v452_v57 = vld [vmem:[#allocation2] sm:$0xff]  ;;  %v561_v58 = vld [vmem:[#allocation5 + $0x78] sm:$0xff] }
  0x45   :  { %745 = vmatprep.subr.mxu0 %v154_v12  ;;  %814 = vmatpush3.msra.mxu1 %v158_v15  ;;  %v560_v59 = vld [vmem:[#allocation5 + $0x70] sm:$0xff]  ;;  %v559_v60 = vld [vmem:[#allocation5 + $0x68] sm:$0xff]  ;;  %v558_v61 = vld [vmem:[#allocation5 + $0x60] sm:$0xff] }
  0x46   :  { %746 = vmatpush3.msra.mxu0 %v138_v13  ;;  %815 = vmatprep.mubr.msk.f32.mxu1 %vm970_vm1, %v969_v14  ;;  %v557_v62 = vld [vmem:[#allocation5 + $0x58] sm:$0xff]  ;;  %v556_v63 = vld [vmem:[#allocation5 + $0x50] sm:$0xff]  ;;  %v555_v0 = vld [vmem:[#allocation5 + $0x48] sm:$0xff] }
  0x47   :  { %747 = vmatprep.subr.mxu0 %v153_v16  ;;  %816 = vmatmul.mubr.msk.f32.vlgmr.msra.gmra.mxu1 %vm167_vm0, %v61_v18  ;;  %v554_v1 = vld [vmem:[#allocation5 + $0x40] sm:$0xff]  ;;  %v553_v2 = vld [vmem:[#allocation5 + $0x38] sm:$0xff]  ;;  %v552_v3 = vld [vmem:[#allocation5 + $0x30] sm:$0xff] }
  0x48   :  { %748 = vmatpush3.msra.mxu0 %v137_v17  ;;  %818 = vmatprep.subr.mxu1 %v969_v14  ;;  %v551_v4 = vld [vmem:[#allocation5 + $0x28] sm:$0xff]  ;;  %v550_v5 = vld [vmem:[#allocation5 + $0x20] sm:$0xff]  ;;  %v549_v6 = vld [vmem:[#allocation5 + $0x18] sm:$0xff] }
  0x49   :  { %749 = vmatprep.subr.mxu0 %v152_v19  ;;  %850 = vmatprep.mubr.msk.f32.mxu1 %vm970_vm1, %v969_v14  ;;  %v665_v15 = vld [vmem:[%s1387_s2] ss:$0 sm:$0xff] }
  0x4a   :  { %750 = vmatpush3.msra.mxu0 %v136_v20  ;;  %819 = vmatpush3.msra.mxu1 %v467_v42 }
  0x4b   :  { %751 = vmatprep.subr.mxu0 %v151_v21  ;;  %820 = vmatprep.subr.mxu1 %v969_v14 }
  0x4c   :  { %752 = vmatpush3.msra.mxu0 %v135_v22  ;;  %821 = vmatpush3.msra.mxu1 %v466_v43 }
  0x4d   :  { %753 = vmatprep.subr.mxu0 %v150_v23  ;;  %822 = vmatprep.subr.mxu1 %v969_v14 }
  0x4e   :  { %754 = vmatpush3.msra.mxu0 %v134_v24  ;;  %823 = vmatpush3.msra.mxu1 %v465_v44 }
  0x4f   :  { %755 = vmatprep.subr.mxu0 %v149_v25  ;;  %824 = vmatprep.subr.mxu1 %v969_v14  ;;  %v548_v25 = vld [vmem:[#allocation5 + $0x10] sm:$0xff] }
  0x50   :  { %756 = vmatpush3.msra.mxu0 %v133_v26  ;;  %825 = vmatpush3.msra.mxu1 %v464_v45  ;;  %v547_v26 = vld [vmem:[#allocation5 + $0x8] sm:$0xff] }
  0x51   :  { %757 = vmatprep.subr.mxu0 %v148_v27  ;;  %826 = vmatprep.subr.mxu1 %v969_v14  ;;  %v546_v27 = vld [vmem:[#allocation5] sm:$0xff] }
  0x52   :  { %758 = vmatpush3.msra.mxu0 %v132_v28  ;;  %827 = vmatpush3.msra.mxu1 %v463_v46  ;;  %v667_v28 = vld [vmem:[%s1389_s4] ss:$0 sm:$0xff]  ;;  %s971_s4 = smov [#allocation7]  }
  0x53   :  { %759 = vmatprep.subr.mxu0 %v147_v29  ;;  %828 = vmatprep.subr.mxu1 %v969_v14  ;;  %s655_s24 = sshll.u32 %s971_s4, 4  ;;  %s656_s24 = int_to_ptr.vmem [resolvable:$true] %s655_s24 }
  0x54   :  { %760 = vmatpush3.msra.mxu0 %v131_v30  ;;  %829 = vmatpush3.msra.mxu1 %v462_v47  ;;  %s939_s25 = scalar_lea.vmem %s656_s24, 128  ;;  %p944_p11 = scmp.lt.s32.totalorder %s656_s24, %s656_s24 }
  0x55   :  { %761 = vmatprep.subr.mxu0 %v146_v31  ;;  %830 = vmatprep.subr.mxu1 %v969_v14  ;;  %p940_p10 = scmp.ne.s32.totalorder %s656_s24, %s939_s25  ;;  %p945_p12 = scmp.lt.s32.totalorder %s939_s25, %s939_s25 }
  0x56   :  { %762 = vmatpush3.msra.mxu0 %v130_v32  ;;  %831 = vmatpush3.msra.mxu1 %v461_v48 }
  0x57   :  { %763 = vmatprep.subr.mxu0 %v145_v33  ;;  %832 = vmatprep.subr.mxu1 %v969_v14  ;;  %v668_v33 = vld [vmem:[%s1391_s6] ss:$0 sm:$0xff]  ;;  %p946_p13 = por %p945_p12, %p944_p11 }
  0x58   :  { %764 = vmatpush3.msra.mxu0 %v129_v34  ;;  %833 = vmatpush3.msra.mxu1 %v460_v49 }
  0x59   :  { %765 = vmatprep.subr.mxu0 %v144_v35  ;;  %834 = vmatprep.subr.mxu1 %v969_v14  ;;  %p947_p0 = pnand %p946_p13, %p940_p10 }
  0x5a   :  { %766 = vmatpush3.msra.mxu0 %v128_v36  ;;  %835 = vmatpush3.msra.mxu1 %v459_v50 }
  0x5b   :  { %767 = vmatprep.subr.mxu0 %v143_v37  ;;  %836 = vmatprep.subr.mxu1 %v969_v14 }
  0x5c   :  { %768 = vmatpush3.msra.mxu0 %v127_v38  ;;  %837 = vmatpush3.msra.mxu1 %v458_v51 }
  0x5d   :  { %769 = vmatprep.subr.mxu0 %v142_v39  ;;  %838 = vmatprep.subr.mxu1 %v969_v14 }
  0x5e   :  { %770 = vmatpush3.msra.mxu0 %v126_v40  ;;  %839 = vmatpush3.msra.mxu1 %v457_v52 }
  0x5f   :  { %376 = vmatmul.mubr.f32.vlgmr.msra.gmra.mxu0 %v59_v41  ;;  %853 = vmatprep.subr.mxu0 %v969_v14 }
  0x60   :  { %885 = vmatprep.mubr.msk.f32.mxu0 %vm970_vm1, %v969_v14  ;;  %840 = vmatprep.subr.mxu1 %v969_v14 }
  0x61   :  { %841 = vmatpush3.msra.mxu1 %v456_v53  ;;  %854 = vmatpush3.msra.mxu0 %v561_v58 }
  0x62   :  { %842 = vmatprep.subr.mxu1 %v969_v14  ;;  %855 = vmatprep.subr.mxu0 %v969_v14 }
  0x63   :  { %843 = vmatpush3.msra.mxu1 %v455_v54  ;;  %856 = vmatpush3.msra.mxu0 %v560_v59 }
  0x64   :  { %844 = vmatprep.subr.mxu1 %v969_v14  ;;  %857 = vmatprep.subr.mxu0 %v969_v14 }
  0x65   :  { %845 = vmatpush3.msra.mxu1 %v454_v55  ;;  %858 = vmatpush3.msra.mxu0 %v559_v60 }
  0x66   :  { %846 = vmatprep.subr.mxu1 %v969_v14  ;;  %859 = vmatprep.subr.mxu0 %v969_v14 }
  0x67   :  { %847 = vmatpush3.msra.mxu1 %v453_v56  ;;  %860 = vmatpush3.msra.mxu0 %v558_v61 }
  0x68   :  { %848 = vmatprep.subr.mxu1 %v969_v14  ;;  %861 = vmatprep.subr.mxu0 %v969_v14 }
  0x69   :  { %849 = vmatpush3.msra.mxu1 %v452_v57  ;;  %862 = vmatpush3.msra.mxu0 %v557_v62 }
  0x6a   :  { %863 = vmatprep.subr.mxu0 %v969_v14 }
  0x6b   :  { %864 = vmatpush3.msra.mxu0 %v556_v63 }
  0x6c   :  { %865 = vmatprep.subr.mxu0 %v969_v14 }
  0x6d   :  { %866 = vmatpush3.msra.mxu0 %v555_v0 }
  0x6e   :  { %867 = vmatprep.subr.mxu0 %v969_v14 }
  0x6f   :  { %868 = vmatpush3.msra.mxu0 %v554_v1 }
  0x70   :  { %869 = vmatprep.subr.mxu0 %v969_v14 }
  0x71   :  { %870 = vmatpush3.msra.mxu0 %v553_v2 }
  0x72   :  { %871 = vmatprep.subr.mxu0 %v969_v14 }
  0x73   :  { %872 = vmatpush3.msra.mxu0 %v552_v3 }
  0x74   :  { %873 = vmatprep.subr.mxu0 %v969_v14 }
  0x75   :  { %874 = vmatpush3.msra.mxu0 %v551_v4 }
  0x76   :  { %875 = vmatprep.subr.mxu0 %v969_v14 }
  0x77   :  { %876 = vmatpush3.msra.mxu0 %v550_v5 }
  0x78   :  { %877 = vmatprep.subr.mxu0 %v969_v14 }
  0x79   :  { %878 = vmatpush3.msra.mxu0 %v549_v6 }
  0x7a   :  { %879 = vmatprep.subr.mxu0 %v969_v14 }
  0x7b   :  { %880 = vmatpush3.msra.mxu0 %v548_v25 }
  0x7c   :  { %881 = vmatprep.subr.mxu0 %v969_v14 }
  0x7d   :  { %882 = vmatpush3.msra.mxu0 %v547_v26 }
  0x7e   :  { %883 = vmatprep.subr.mxu0 %v969_v14 }
  0x7f   :  { %884 = vmatpush3.msra.mxu0 %v546_v27 }
  0xfd   :  { %v701_v11 = vpop.f32.mrf.mxu0 }
  0xff   :  { %v702_v12 = vpop.f32.mrf.mxu0 }
 0x100   :  { %v736_v7 = vpop.f32.mrf.mxu1  ;;  %v703_v13 = vadd.f32 %v702_v12, %v701_v11 }
 0x102   :  { %v737_v8 = vpop.f32.mrf.mxu1  ;;  %v238_v16 = vadd.f32 %v703_v13, %v665_v15 }
 0x103   :  { %v738_v17 = vadd.f32 %v737_v8, %v736_v7 }
 0x105   :  { %v308_v20 = vadd.f32 %v738_v17, %v238_v16 }
 0x107   :  { %v447_v9 = vpop.f32.mrf.mxu1 }
 0x109   :  { %v817_v10 = vpop.f32.mrf.mxu1 }
 0x11f   :  { %v771_v18 = vpop.f32.mrf.mxu0 }
 0x121   :  { %v772_v19 = vpop.f32.mrf.mxu0 }
 0x122   :  { %v773_v21 = vadd.f32 %v772_v19, %v771_v18 }
 0x124   :  { %v378_v22 = vadd.f32 %v773_v21, %v308_v20 }
 0x126   :  { %v448_v23 = vadd.f32 %v447_v9, %v378_v22 }
 0x128   :  { %v451_v24 = vmax.f32 %v448_v23, 0.0 }
 0x12a   :  { %851 = vmatmul.mubr.f32.vlgmr.msra.gmra.mxu1 %v451_v24 }
 0x1ea   :  { %v541_v29 = vpop.f32.mrf.mxu1 }
 0x1eb   :  { %v542_v30 = vadd.f32 %v667_v28, %v541_v29 }
 0x1ec   :  { %v852_v31 = vpop.f32.mrf.mxu1 }
 0x1ed   :  { %v545_v32 = vmax.f32 %v542_v30, 0.0 }
 0x1ef   :  { %886 = vmatmul.mubr.f32.vlgmr.msra.gmra.mxu0 %v545_v32 }
 0x2af   :  { %v635_v34 = vpop.f32.mrf.mxu0 }
 0x2b0   :  { %v636_v35 = vadd.f32 %v668_v33, %v635_v34 }
 0x2b1   :  { %v887_v36 = vpop.f32.mrf.mxu0 }
 0x2b2   :  { %639 = vmax.xlane.f32.xlu0 %v636_v35 }
 0x33b   :  { %v640_v14 = vpop.xlane.xlu0 %639 }
 0x33c   :  { %v641_v37 = vsub.f32 %v636_v35, %v640_v14 }
 0x33e   :  { %v642_v38 = vmul.f32 1.442695, %v641_v37 }
 0x340   :  { %895 = vpow2.f32 %v642_v38 }
 0x34d   :  { %v896_v39 = vpop.eup %895 }
 0x34e   :  { %644 = vadd.xlane.f32.xlu0 %v896_v39 }
 0x3d7   :  { %v645_v40 = vpop.xlane.xlu0 %644 }
 0x3d8   :  { %897 = vrcp.f32 %v645_v40 }
 0x3e5   :  { %v898_v41 = vpop.eup %897 }
 0x3e6   :  { %v647_v42 = vmul.f32 %v898_v41, %v896_v39 }
 0x3e8   :  { %648 = vst [vmem:[#allocation7] sm:$0xff] %v647_v42 }
 0x3e9   :  { %950 = shalt.err (!%p947_p0)
}
 0x3ea   :  { %658 = dma.vmem_to_hbm [thread:$0]  %s656_s24, 128, %s1392_s7, [#allocation4]  }
 0x3eb   :  { %963 = dma.done.wait [#allocation4], 128  }
 0x3ec   :  { %964 = vsyncadd [#allocation4], 4294967168 }
 0x3ed   :  { %662 = vsyncpa [#allocation3], 1 }
 0x3ee   :  { %663 = vsyncpa [#allocation6], 1 }
 0x3ef   :  { %664 = vsyncpa [#allocation4], 1 }

</bundles_post_ra>
